<compile_context>
chip_gen: v6e
topology: v6e:2x2x1
jax: 0.10.0
libtpu: 0.0.40
codegen_flags: <defaults>
</compile_context>

<pallas_src>
import functools

import jax
import jax.numpy as jnp
from jax.experimental import pallas as pl
from jax.experimental.pallas import tpu as pltpu

LANE = 128          # lane width (last-dim alignment)
SUBLANE_BF16 = 16   # bf16 sublane packing (batch-tile alignment)


def _round_up(x, m):
    return (x + m - 1) // m * m


def _choose_tb(B, d_pad, hid_pad, z_pad):
    """Batch tile: 128 baseline; 256 on large B if it fits a 48 MiB budget."""
    tb = min(128, _round_up(max(B, 1), SUBLANE_BF16))
    if B >= 256:
        # Resident weights double-buffered (worst case) + double-buffered
        # activation tiles at tb=256; keep under 48 MiB (v7x has 64 MiB / TC).
        weight_bytes = 2 * 2 * (d_pad * hid_pad + hid_pad * 2 * z_pad
                                + z_pad * hid_pad + hid_pad * d_pad)
        act_bytes = 2 * (256 * d_pad * 4      # x tile (f32 worst case)
                         + 256 * d_pad * 2    # x_recon tile (bf16)
                         + 3 * 256 * z_pad * 4)
        if weight_bytes + act_bytes < 48 * 1024 * 1024:
            tb = 256
    return tb


def _make_vae_kernel(z_pad: int):
    def vae_kernel(x_ref, w_e1_ref, b_e1_ref, w_e2_ref, b_e2_ref,
                   eps_ref, w_d1_ref, b_d1_ref, w_d2_ref, b_d2_ref,
                   xrec_ref, mu_ref, logvar_ref):
        # ---- encoder: Linear -> ReLU -> Linear (bf16 MXU, f32 accumulate) ---
        x = x_ref[...].astype(jnp.bfloat16)            # free VPU cast if f32
        h = jnp.dot(x, w_e1_ref[...], preferred_element_type=jnp.float32)
        h = jnp.maximum(h + b_e1_ref[...], 0.0)
        dist = jnp.dot(h.astype(jnp.bfloat16), w_e2_ref[...],
                       preferred_element_type=jnp.float32) + b_e2_ref[...]

        # lane-aligned mu / logvar split (z_dim padded to a multiple of 128)
        mu = dist[:, :z_pad]
        logvar = dist[:, z_pad:]

        # ---- reparametrize (training mode): z = mu + exp(logvar/2) * eps ---
        std = jnp.exp(logvar * 0.5)
        z = mu + std * eps_ref[...]

        # ---- decoder: Linear -> ReLU -> Linear -----------------------------
        hd = jnp.dot(z.astype(jnp.bfloat16), w_d1_ref[...],
                     preferred_element_type=jnp.float32)
        hd = jnp.maximum(hd + b_d1_ref[...], 0.0)
        x_recon = jnp.dot(hd.astype(jnp.bfloat16), w_d2_ref[...],
                          preferred_element_type=jnp.float32) + b_d2_ref[...]

        xrec_ref[...] = x_recon.astype(xrec_ref.dtype)   # bf16 writeback
        mu_ref[...] = mu
        logvar_ref[...] = logvar

    return vae_kernel


def prepare_params(params, D, hidden, z_dim):
    """One-time weight preparation (pad to lane multiples, cast to bf16,
    re-layout the encoder head as [mu | pad | logvar]). Reuse across calls."""
    d_pad = _round_up(D, LANE)
    hid_pad = _round_up(hidden, LANE)
    z_pad = _round_up(z_dim, LANE)

    def pad_w(w, r, c):
        return jnp.zeros((r, c), jnp.bfloat16).at[
            :w.shape[0], :w.shape[1]].set(w.astype(jnp.bfloat16))

    def pad_b(b, c):
        return jnp.zeros((1, c), jnp.float32).at[:, :b.shape[1]].set(b)

    # encoder head laid out as [mu | logvar] at the padded (128-lane) boundary
    w_e2 = jnp.zeros((hid_pad, 2 * z_pad), jnp.bfloat16)
    w_e2 = w_e2.at[:hidden, :z_dim].set(
        params["w_e2"][:, :z_dim].astype(jnp.bfloat16))
    w_e2 = w_e2.at[:hidden, z_pad:z_pad + z_dim].set(
        params["w_e2"][:, z_dim:].astype(jnp.bfloat16))
    b_e2 = jnp.zeros((1, 2 * z_pad), jnp.float32)
    b_e2 = b_e2.at[:, :z_dim].set(params["b_e2"][:, :z_dim])
    b_e2 = b_e2.at[:, z_pad:z_pad + z_dim].set(params["b_e2"][:, z_dim:])

    prepared = {
        "w_e1": pad_w(params["w_e1"], d_pad, hid_pad),
        "b_e1": pad_b(params["b_e1"], hid_pad),
        "w_e2": w_e2,
        "b_e2": b_e2,
        "w_d1": pad_w(params["w_d1"], z_pad, hid_pad),
        "b_d1": pad_b(params["b_d1"], hid_pad),
        "w_d2": pad_w(params["w_d2"], hid_pad, d_pad),
        "b_d2": pad_b(params["b_d2"], d_pad),
    }
    meta = dict(D=D, hidden=hidden, z_dim=z_dim,
                d_pad=d_pad, hid_pad=hid_pad, z_pad=z_pad)
    return prepared, meta


def make_vae_forward(prepared, meta):
    """Returns jitted fwd(x_nchw, eps) -> (x_recon bf16 [B,C,H,W], mu, logvar)."""
    D, z_dim = meta["D"], meta["z_dim"]
    d_pad, hid_pad, z_pad = meta["d_pad"], meta["hid_pad"], meta["z_pad"]

    @jax.jit
    def fwd(x_nchw, eps):
        B, C, H, W = x_nchw.shape
        assert C * H * W == D

        tb = _choose_tb(B, d_pad, hid_pad, z_pad)
        b_pad = _round_up(B, tb)

        x_flat = x_nchw.reshape(B, D)
        # Aligned fast path: no host-side pad/cast pass; kernel casts f32->bf16.
        if b_pad == B and d_pad == D:
            xp = x_flat
        else:
            xp = jnp.zeros((b_pad, d_pad), jnp.bfloat16).at[:B, :D].set(
                x_flat.astype(jnp.bfloat16))
        if b_pad == B and z_pad == z_dim:
            epsp = eps
        else:
            epsp = jnp.zeros((b_pad, z_pad), jnp.float32).at[:B, :z_dim].set(eps)

        grid = (b_pad // tb,)

        def tile(shape):          # pipelined per-batch-tile block
            return pl.BlockSpec(shape, lambda i: (i, 0))

        def resident(shape):      # constant index -> stays in VMEM
            return pl.BlockSpec(shape, lambda i: (0, 0))

        flops = 2 * b_pad * (d_pad * hid_pad + hid_pad * 2 * z_pad
                             + z_pad * hid_pad + hid_pad * d_pad)
        bytes_accessed = (
            xp.size * xp.dtype.itemsize
            + epsp.size * epsp.dtype.itemsize
            + sum(int(v.size) * v.dtype.itemsize for v in prepared.values())
            + b_pad * d_pad * 2                    # x_recon (bf16)
            + 2 * b_pad * z_pad * 4)               # mu, logvar (f32)

        kernel = _make_vae_kernel(z_pad)
        xrec_p, mu_p, logvar_p = pl.pallas_call(
            kernel,
            grid=grid,
            out_shape=(
                jax.ShapeDtypeStruct((b_pad, d_pad), jnp.bfloat16),  # x_recon
                jax.ShapeDtypeStruct((b_pad, z_pad), jnp.float32),   # mu
                jax.ShapeDtypeStruct((b_pad, z_pad), jnp.float32),   # logvar
            ),
            in_specs=[
                tile((tb, d_pad)),                  # x
                resident((d_pad, hid_pad)),         # w_e1
                resident((1, hid_pad)),             # b_e1
                resident((hid_pad, 2 * z_pad)),     # w_e2
                resident((1, 2 * z_pad)),           # b_e2
                tile((tb, z_pad)),                  # eps
                resident((z_pad, hid_pad)),         # w_d1
                resident((1, hid_pad)),             # b_d1
                resident((hid_pad, d_pad)),         # w_d2
                resident((1, d_pad)),               # b_d2
            ],
            out_specs=(
                tile((tb, d_pad)),
                tile((tb, z_pad)),
                tile((tb, z_pad)),
            ),
            compiler_params=pltpu.CompilerParams(
                dimension_semantics=("parallel",),   # both TCs on v7x
                vmem_limit_bytes=48 * 1024 * 1024,   # within v7x's 64 MiB / TC
            ),
            cost_estimate=pl.CostEstimate(
                flops=flops,
                transcendentals=b_pad * z_pad,
                bytes_accessed=bytes_accessed,
            ),
        )(xp, prepared["w_e1"], prepared["b_e1"], prepared["w_e2"],
          prepared["b_e2"], epsp, prepared["w_d1"], prepared["b_d1"],
          prepared["w_d2"], prepared["b_d2"])

        if b_pad == B and d_pad == D:
            x_recon = xrec_p.reshape(B, C, H, W)
        else:
            x_recon = xrec_p[:B, :D].reshape(B, C, H, W)
        mu = mu_p[:B, :z_dim]
        logvar = logvar_p[:B, :z_dim]
        return x_recon, mu, logvar

    return fwd


def init_params(key, D, hidden, z_dim):
    """Kaiming-normal (fan_in) weights, zero biases — matches kaiming_init."""
    ks = jax.random.split(key, 4)

    def kaiming(k, fan_in, fan_out):
        std = jnp.sqrt(2.0 / fan_in)
        return jax.random.normal(k, (fan_in, fan_out), jnp.float32) * std

    return {
        # encoder
        "w_e1": kaiming(ks[0], D, hidden),
        "b_e1": jnp.zeros((1, hidden), jnp.float32),
        "w_e2": kaiming(ks[1], hidden, 2 * z_dim),
        "b_e2": jnp.zeros((1, 2 * z_dim), jnp.float32),
        # decoder
        "w_d1": kaiming(ks[2], z_dim, hidden),
        "b_d1": jnp.zeros((1, hidden), jnp.float32),
        "w_d2": kaiming(ks[3], hidden, D),
        "b_d2": jnp.zeros((1, D), jnp.float32),
    }


if __name__ == "__main__":
    # Small shapes consistent with the module's image-VAE forward.
    C, H, W = 4, 16, 16
    z_dim, hidden = 10, 32
    D = C * H * W

    key = jax.random.PRNGKey(0)
    k_p, k_x1, k_e1, k_x2, k_e2 = jax.random.split(key, 5)

    params = init_params(k_p, D, hidden, z_dim)
    prepared, meta = prepare_params(params, D, hidden, z_dim)   # one-time
    fwd = make_vae_forward(prepared, meta)

    def reference(x, eps):
        # pure-JAX reference with matching bf16-input / f32-accumulate numerics
        bf = jnp.bfloat16
        Bq = x.shape[0]
        x_flat = x.reshape(Bq, D)
        h = jnp.maximum(
            jnp.dot(x_flat.astype(bf), params["w_e1"].astype(bf),
                    preferred_element_type=jnp.float32) + params["b_e1"], 0.0)
        dist = jnp.dot(h.astype(bf), params["w_e2"].astype(bf),
                       preferred_element_type=jnp.float32) + params["b_e2"]
        mu_r, logvar_r = dist[:, :z_dim], dist[:, z_dim:]
        z_r = mu_r + jnp.exp(logvar_r * 0.5) * eps
        hd = jnp.maximum(
            jnp.dot(z_r.astype(bf), params["w_d1"].astype(bf),
                    preferred_element_type=jnp.float32) + params["b_d1"], 0.0)
        xr = (jnp.dot(hd.astype(bf), params["w_d2"].astype(bf),
                      preferred_element_type=jnp.float32)
              + params["b_d2"]).reshape(x.shape)
        return xr, mu_r, logvar_r

    def run_and_check(B, kx, keps):
        x = jax.random.normal(kx, (B, C, H, W), jnp.float32)
        # TODO(synk): torch draws eps internally with std.data.new(...).normal_();
        # here deterministic noise is passed in (could use pltpu.prng_random_bits).
        eps = jax.random.normal(keps, (B, z_dim), jnp.float32)
        x_recon, mu, logvar = jax.block_until_ready(fwd(x, eps))
        xr_ref, mu_ref, lv_ref = reference(x, eps)
        assert jnp.allclose(mu, mu_ref, atol=2e-2, rtol=2e-2)
        assert jnp.allclose(logvar, lv_ref, atol=2e-2, rtol=2e-2)
        assert jnp.allclose(x_recon.astype(jnp.float32), xr_ref,
                            atol=3e-2, rtol=3e-2)

    run_and_check(2, k_x1, k_e1)    # padded path (B=2 -> 16-row tile, z padded)
    run_and_check(16, k_x2, k_e2)   # aligned fast path for x (B == tile, D%128==0)

    print("KERNEL_OK")
</pallas_src>

<mosaic_0001>
module attributes {stable_mosaic.version = 11 : i64} {
  func.func @vae_kernel(%arg0: i32, %arg1: memref<16x1024xbf16, #tpu.memory_space<vmem>>, %arg2: memref<1024x128xbf16, #tpu.memory_space<vmem>>, %arg3: memref<1x128xf32, #tpu.memory_space<vmem>>, %arg4: memref<128x256xbf16, #tpu.memory_space<vmem>>, %arg5: memref<1x256xf32, #tpu.memory_space<vmem>>, %arg6: memref<16x128xf32, #tpu.memory_space<vmem>>, %arg7: memref<128x128xbf16, #tpu.memory_space<vmem>>, %arg8: memref<1x128xf32, #tpu.memory_space<vmem>>, %arg9: memref<128x1024xbf16, #tpu.memory_space<vmem>>, %arg10: memref<1x1024xf32, #tpu.memory_space<vmem>>, %arg11: memref<16x1024xbf16, #tpu.memory_space<vmem>>, %arg12: memref<16x128xf32, #tpu.memory_space<vmem>>, %arg13: memref<16x128xf32, #tpu.memory_space<vmem>>) attributes {dimension_semantics = [#tpu.dimension_semantics<parallel>], iteration_bounds = array<i64: 1>, scalar_prefetch = 0 : i64, scratch_operands = 0 : i64, tpu.core_type = #tpu.core_type<tc>, window_params = [{transform_indices = @transform_0, window_bounds = array<i64: 16, 1024>}, {pipeline_mode = #tpu.pipeline_mode<synchronous>, transform_indices = @transform_1, window_bounds = array<i64: 1024, 128>}, {pipeline_mode = #tpu.pipeline_mode<synchronous>, transform_indices = @transform_2, window_bounds = array<i64: 1, 128>}, {pipeline_mode = #tpu.pipeline_mode<synchronous>, transform_indices = @transform_3, window_bounds = array<i64: 128, 256>}, {pipeline_mode = #tpu.pipeline_mode<synchronous>, transform_indices = @transform_4, window_bounds = array<i64: 1, 256>}, {transform_indices = @transform_5, window_bounds = array<i64: 16, 128>}, {pipeline_mode = #tpu.pipeline_mode<synchronous>, transform_indices = @transform_6, window_bounds = array<i64: 128, 128>}, {pipeline_mode = #tpu.pipeline_mode<synchronous>, transform_indices = @transform_7, window_bounds = array<i64: 1, 128>}, {pipeline_mode = #tpu.pipeline_mode<synchronous>, transform_indices = @transform_8, window_bounds = array<i64: 128, 1024>}, {pipeline_mode = #tpu.pipeline_mode<synchronous>, transform_indices = @transform_9, window_bounds = array<i64: 1, 1024>}, {transform_indices = @transform_10, window_bounds = array<i64: 16, 1024>}, {transform_indices = @transform_11, window_bounds = array<i64: 16, 128>}, {transform_indices = @transform_12, window_bounds = array<i64: 16, 128>}]} {
    %c0 = arith.constant 0 : index
    %c0_0 = arith.constant 0 : index
    %0 = vector.load %arg1[%c0, %c0_0] : memref<16x1024xbf16, #tpu.memory_space<vmem>>, vector<16x1024xbf16>
    %c0_1 = arith.constant 0 : index
    %c0_2 = arith.constant 0 : index
    %1 = vector.load %arg2[%c0_1, %c0_2] : memref<1024x128xbf16, #tpu.memory_space<vmem>>, vector<1024x128xbf16>
    %cst = arith.constant dense<0.000000e+00> : vector<16x128xf32>
    %2 = tpu.matmul %0, %1, %cst {dimension_numbers = #tpu.dot_dimension_numbers<[1], [0], [0], [1], [0, 0, 1, 1], [], []>} : vector<16x1024xbf16>, vector<1024x128xbf16>, vector<16x128xf32> -> vector<16x128xf32>
    %c0_3 = arith.constant 0 : index
    %c0_4 = arith.constant 0 : index
    %3 = vector.load %arg3[%c0_3, %c0_4] : memref<1x128xf32, #tpu.memory_space<vmem>>, vector<1x128xf32>
    %4 = vector.broadcast %3 : vector<1x128xf32> to vector<16x128xf32>
    %5 = arith.addf %2, %4 : vector<16x128xf32>
    %cst_5 = arith.constant 0.000000e+00 : f32
    %6 = vector.broadcast %cst_5 : f32 to vector<16x128xf32>
    %7 = arith.maximumf %5, %6 : vector<16x128xf32>
    %8 = arith.truncf %7 : vector<16x128xf32> to vector<16x128xbf16>
    %c0_6 = arith.constant 0 : index
    %c0_7 = arith.constant 0 : index
    %9 = vector.load %arg4[%c0_6, %c0_7] : memref<128x256xbf16, #tpu.memory_space<vmem>>, vector<128x256xbf16>
    %cst_8 = arith.constant dense<0.000000e+00> : vector<16x256xf32>
    %10 = tpu.matmul %8, %9, %cst_8 {dimension_numbers = #tpu.dot_dimension_numbers<[1], [0], [0], [1], [0, 0, 1, 1], [], []>} : vector<16x128xbf16>, vector<128x256xbf16>, vector<16x256xf32> -> vector<16x256xf32>
    %c0_9 = arith.constant 0 : index
    %c0_10 = arith.constant 0 : index
    %11 = vector.load %arg5[%c0_9, %c0_10] : memref<1x256xf32, #tpu.memory_space<vmem>>, vector<1x256xf32>
    %12 = vector.broadcast %11 : vector<1x256xf32> to vector<16x256xf32>
    %13 = arith.addf %10, %12 : vector<16x256xf32>
    %14 = vector.extract_strided_slice %13 {offsets = [0, 0], sizes = [16, 128], strides = [1, 1]} : vector<16x256xf32> to vector<16x128xf32>
    %15 = vector.extract_strided_slice %13 {offsets = [0, 128], sizes = [16, 128], strides = [1, 1]} : vector<16x256xf32> to vector<16x128xf32>
    %cst_11 = arith.constant 5.000000e-01 : f32
    %16 = vector.broadcast %cst_11 : f32 to vector<16x128xf32>
    %17 = arith.mulf %15, %16 : vector<16x128xf32>
    %18 = math.exp %17 : vector<16x128xf32>
    %c0_12 = arith.constant 0 : index
    %c0_13 = arith.constant 0 : index
    %19 = vector.load %arg6[%c0_12, %c0_13] : memref<16x128xf32, #tpu.memory_space<vmem>>, vector<16x128xf32>
    %20 = arith.mulf %18, %19 : vector<16x128xf32>
    %21 = arith.addf %14, %20 : vector<16x128xf32>
    %22 = arith.truncf %21 : vector<16x128xf32> to vector<16x128xbf16>
    %c0_14 = arith.constant 0 : index
    %c0_15 = arith.constant 0 : index
    %23 = vector.load %arg7[%c0_14, %c0_15] : memref<128x128xbf16, #tpu.memory_space<vmem>>, vector<128x128xbf16>
    %cst_16 = arith.constant dense<0.000000e+00> : vector<16x128xf32>
    %24 = tpu.matmul %22, %23, %cst_16 {dimension_numbers = #tpu.dot_dimension_numbers<[1], [0], [0], [1], [0, 0, 1, 1], [], []>} : vector<16x128xbf16>, vector<128x128xbf16>, vector<16x128xf32> -> vector<16x128xf32>
    %c0_17 = arith.constant 0 : index
    %c0_18 = arith.constant 0 : index
    %25 = vector.load %arg8[%c0_17, %c0_18] : memref<1x128xf32, #tpu.memory_space<vmem>>, vector<1x128xf32>
    %26 = vector.broadcast %25 : vector<1x128xf32> to vector<16x128xf32>
    %27 = arith.addf %24, %26 : vector<16x128xf32>
    %cst_19 = arith.constant 0.000000e+00 : f32
    %28 = vector.broadcast %cst_19 : f32 to vector<16x128xf32>
    %29 = arith.maximumf %27, %28 : vector<16x128xf32>
    %30 = arith.truncf %29 : vector<16x128xf32> to vector<16x128xbf16>
    %c0_20 = arith.constant 0 : index
    %c0_21 = arith.constant 0 : index
    %31 = vector.load %arg9[%c0_20, %c0_21] : memref<128x1024xbf16, #tpu.memory_space<vmem>>, vector<128x1024xbf16>
    %cst_22 = arith.constant dense<0.000000e+00> : vector<16x1024xf32>
    %32 = tpu.matmul %30, %31, %cst_22 {dimension_numbers = #tpu.dot_dimension_numbers<[1], [0], [0], [1], [0, 0, 1, 1], [], []>} : vector<16x128xbf16>, vector<128x1024xbf16>, vector<16x1024xf32> -> vector<16x1024xf32>
    %c0_23 = arith.constant 0 : index
    %c0_24 = arith.constant 0 : index
    %33 = vector.load %arg10[%c0_23, %c0_24] : memref<1x1024xf32, #tpu.memory_space<vmem>>, vector<1x1024xf32>
    %34 = vector.broadcast %33 : vector<1x1024xf32> to vector<16x1024xf32>
    %35 = arith.addf %32, %34 : vector<16x1024xf32>
    %36 = arith.truncf %35 : vector<16x1024xf32> to vector<16x1024xbf16>
    %c0_25 = arith.constant 0 : index
    %c0_26 = arith.constant 0 : index
    %37 = vector.load %arg11[%c0_25, %c0_26] : memref<16x1024xbf16, #tpu.memory_space<vmem>>, vector<16x1024xbf16>
    tpu.vector_store %arg11[%c0_25, %c0_26], %36 {strides = array<i32>} : memref<16x1024xbf16, #tpu.memory_space<vmem>>, vector<16x1024xbf16>,
    %c0_27 = arith.constant 0 : index
    %c0_28 = arith.constant 0 : index
    %38 = vector.load %arg12[%c0_27, %c0_28] : memref<16x128xf32, #tpu.memory_space<vmem>>, vector<16x128xf32>
    tpu.vector_store %arg12[%c0_27, %c0_28], %14 {strides = array<i32>} : memref<16x128xf32, #tpu.memory_space<vmem>>, vector<16x128xf32>,
    %c0_29 = arith.constant 0 : index
    %c0_30 = arith.constant 0 : index
    %39 = vector.load %arg13[%c0_29, %c0_30] : memref<16x128xf32, #tpu.memory_space<vmem>>, vector<16x128xf32>
    tpu.vector_store %arg13[%c0_29, %c0_30], %15 {strides = array<i32>} : memref<16x128xf32, #tpu.memory_space<vmem>>, vector<16x128xf32>,
    return
  }
  func.func @transform_0(%arg0: i32) -> (i32, i32) {
    %c0_i32 = arith.constant 0 : i32
    %c0_i32_0 = arith.constant 0 : i32
    return %arg0, %c0_i32 : i32, i32
  }
  func.func @transform_1(%arg0: i32) -> (i32, i32) {
    %c0_i32 = arith.constant 0 : i32
    %c0_i32_0 = arith.constant 0 : i32
    %c0_i32_1 = arith.constant 0 : i32
    return %c0_i32, %c0_i32_0 : i32, i32
  }
  func.func @transform_2(%arg0: i32) -> (i32, i32) {
    %c0_i32 = arith.constant 0 : i32
    %c0_i32_0 = arith.constant 0 : i32
    %c0_i32_1 = arith.constant 0 : i32
    return %c0_i32, %c0_i32_0 : i32, i32
  }
  func.func @transform_3(%arg0: i32) -> (i32, i32) {
    %c0_i32 = arith.constant 0 : i32
    %c0_i32_0 = arith.constant 0 : i32
    %c0_i32_1 = arith.constant 0 : i32
    return %c0_i32, %c0_i32_0 : i32, i32
  }
  func.func @transform_4(%arg0: i32) -> (i32, i32) {
    %c0_i32 = arith.constant 0 : i32
    %c0_i32_0 = arith.constant 0 : i32
    %c0_i32_1 = arith.constant 0 : i32
    return %c0_i32, %c0_i32_0 : i32, i32
  }
  func.func @transform_5(%arg0: i32) -> (i32, i32) {
    %c0_i32 = arith.constant 0 : i32
    %c0_i32_0 = arith.constant 0 : i32
    return %arg0, %c0_i32 : i32, i32
  }
  func.func @transform_6(%arg0: i32) -> (i32, i32) {
    %c0_i32 = arith.constant 0 : i32
    %c0_i32_0 = arith.constant 0 : i32
    %c0_i32_1 = arith.constant 0 : i32
    return %c0_i32, %c0_i32_0 : i32, i32
  }
  func.func @transform_7(%arg0: i32) -> (i32, i32) {
    %c0_i32 = arith.constant 0 : i32
    %c0_i32_0 = arith.constant 0 : i32
    %c0_i32_1 = arith.constant 0 : i32
    return %c0_i32, %c0_i32_0 : i32, i32
  }
  func.func @transform_8(%arg0: i32) -> (i32, i32) {
    %c0_i32 = arith.constant 0 : i32
    %c0_i32_0 = arith.constant 0 : i32
    %c0_i32_1 = arith.constant 0 : i32
    return %c0_i32, %c0_i32_0 : i32, i32
  }
  func.func @transform_9(%arg0: i32) -> (i32, i32) {
    %c0_i32 = arith.constant 0 : i32
    %c0_i32_0 = arith.constant 0 : i32
    %c0_i32_1 = arith.constant 0 : i32
    return %c0_i32, %c0_i32_0 : i32, i32
  }
  func.func @transform_10(%arg0: i32) -> (i32, i32) {
    %c0_i32 = arith.constant 0 : i32
    %c0_i32_0 = arith.constant 0 : i32
    return %arg0, %c0_i32 : i32, i32
  }
  func.func @transform_11(%arg0: i32) -> (i32, i32) {
    %c0_i32 = arith.constant 0 : i32
    %c0_i32_0 = arith.constant 0 : i32
    return %arg0, %c0_i32 : i32, i32
  }
  func.func @transform_12(%arg0: i32) -> (i32, i32) {
    %c0_i32 = arith.constant 0 : i32
    %c0_i32_0 = arith.constant 0 : i32
    return %arg0, %c0_i32 : i32, i32
  }
}

</mosaic_0001>

<bundles_post_ra>
// kernel: fwd.1
= control target key start
LH: loop header
LB: loop body
LE: loop exit
PB: predicated region body
PF: predicated region fallthrough
CT: control target
= control target key end

     0   :  { %18 = vsyncpa [#allocation3], 0  ;;  %s2470_s0 = inlined_call_operand.vmem [shape: bf16[16,1024], index: 0, kind: input, shape index: {}]   ;;  %s2471_s1 = inlined_call_operand.hbm [shape: bf16[1024,128], index: 1, kind: input, shape index: {}]   ;;  %s2472_s2 = inlined_call_operand.vmem [shape: f32[1,128], index: 2, kind: input, shape index: {}, may-alias: {2,7}]   ;;  %s2473_s3 = inlined_call_operand.vmem [shape: bf16[128,256], index: 3, kind: input, shape index: {}]   ;;  %s2474_s4 = inlined_call_operand.vmem [shape: f32[1,256], index: 4, kind: input, shape index: {}]   ;;  %s2475_s5 = inlined_call_operand.vmem [shape: f32[16,128], index: 5, kind: input, shape index: {}]   ;;  %s2476_s6 = inlined_call_operand.vmem [shape: bf16[128,128], index: 6, kind: input, shape index: {}]   ;;  %s2477_s7 = inlined_call_operand.vmem [shape: f32[1,128], index: 7, kind: input, shape index: {}, may-alias: {2,7}]   ;;  %s2478_s8 = inlined_call_operand.hbm [shape: bf16[128,1024], index: 8, kind: input, shape index: {}]   ;;  %s2479_s9 = inlined_call_operand.vmem [shape: f32[1,1024], index: 9, kind: input, shape index: {}]   ;;  %s2480_s10 = inlined_call_operand.vmem [shape: bf16[16,1024], index: 10, kind: output, shape index: {0}]   ;;  %s2481_s11 = inlined_call_operand.vmem [shape: f32[16,128], index: 11, kind: output, shape index: {1}]   ;;  %s2482_s12 = inlined_call_operand.vmem [shape: f32[16,128], index: 12, kind: output, shape index: {2}]  }
   0x1   :  { %19 = vsyncpa [#allocation5], 0  ;;  %s2200_s21 = smov [#allocation2]  }
   0x2   :  { %s27_s22 = sshll.u32 %s2200_s21, 4  ;;  %s28_s22 = int_to_ptr.vmem [resolvable:$true] %s27_s22 }
   0x3   :  { %s2164_s23 = scalar_lea.vmem %s28_s22, 8192  ;;  %p2169_p1 = scmp.lt.s32.totalorder %s28_s22, %s28_s22 }
   0x4   :  { %p2165_p0 = scmp.ne.s32.totalorder %s28_s22, %s2164_s23  ;;  %p2170_p2 = scmp.lt.s32.totalorder %s2164_s23, %s2164_s23 }
   0x6   :  { %p2171_p3 = por %p2170_p2, %p2169_p1 }
   0x8   :  { %p2172_p4 = pnand %p2171_p3, %p2165_p0 }
   0xa   :  { %2175 = shalt.err (!%p2172_p4)
}
   0xb   :  { %s2201_s24 = smov 64   ;;  %s2202_s25 = smov 4  }
   0xc   :  { %33 = dma.hbm_to_vmem [thread:$0]  %s2471_s1, 8192, %s28_s22, [#allocation3], %s2201_s24, %s2201_s24, %s2202_s25  }
   0xd   :  { %s2203_s28 = smov [#allocation4]  }
   0xe   :  { %s51_s29 = sshll.u32 %s2203_s28, 4  ;;  %s52_s29 = int_to_ptr.vmem [resolvable:$true] %s51_s29 }
   0xf   :  { %s2184_s30 = scalar_lea.vmem %s52_s29, 8192  ;;  %p2189_p6 = scmp.lt.s32.totalorder %s52_s29, %s52_s29 }
  0x10   :  { %p2185_p5 = scmp.ne.s32.totalorder %s52_s29, %s2184_s30  ;;  %p2190_p7 = scmp.lt.s32.totalorder %s2184_s30, %s2184_s30 }
  0x12   :  { %p2191_p8 = por %p2190_p7, %p2189_p6 }
  0x14   :  { %p2192_p9 = pnand %p2191_p8, %p2185_p5 }
  0x16   :  { %2195 = shalt.err (!%p2192_p9)
}
  0x17   :  { %s2204_s13 = smov 512   ;;  %s2205_s14 = smov 32  }
  0x18   :  { %57 = dma.hbm_to_vmem [thread:$0]  %s2478_s8, 8192, %s52_s29, [#allocation5], %s2204_s13, %s2204_s13, %s2205_s14  }
  0x19   :  { %2196 = dma.done.wait [#allocation3], 8192  }
  0x1a   :  { %2197 = vsyncadd [#allocation3], 4294959104 }
  0x1b   :  { %2198 = dma.done.wait [#allocation5], 8192  }
  0x1c   :  { %2199 = vsyncadd [#allocation5], 4294959104  ;;  %v2056_v0 = vld [vmem:[#allocation2 + $0x78] sm:$0xff]   ;;  %v2060_v4 = vld [vmem:[#allocation2 + $0x70] sm:$0xff]   ;;  %vm2208_vm0 = vmmov 0  }
  0x1d   :  { %v2057_v1 = vld [vmem:[#allocation2 + $0xf8] sm:$0xff]   ;;  %1930 = vmatprep.subr.bf16.mxu0 %v2056_v0  ;;  %v2061_v5 = vld [vmem:[#allocation2 + $0xf0] sm:$0xff]   ;;  %v2064_v8 = vld [vmem:[#allocation2 + $0x68] sm:$0xff]  }
  0x1e   :  { %v2058_v2 = vld [vmem:[#allocation2 + $0x38] sm:$0xff]   ;;  %1952 = vmatprep.subr.bf16.mxu1 %v2057_v1  ;;  %v2062_v6 = vld [vmem:[#allocation2 + $0x30] sm:$0xff]   ;;  %v2065_v9 = vld [vmem:[#allocation2 + $0xe8] sm:$0xff]  }
  0x1f   :  { %v2059_v3 = vld [vmem:[#allocation2 + $0xb8] sm:$0xff]   ;;  %1931 = vmatpush3.bf16.msra.mxu0 %v2058_v2  ;;  %v2063_v7 = vld [vmem:[#allocation2 + $0xb0] sm:$0xff]   ;;  %v2066_v10 = vld [vmem:[#allocation2 + $0x28] sm:$0xff]  }
  0x20   :  { %1953 = vmatpush3.bf16.msra.mxu1 %v2059_v3  ;;  %1932 = vmatprep.subr.bf16.mxu0 %v2060_v4  ;;  %v2067_v11 = vld [vmem:[#allocation2 + $0xa8] sm:$0xff]   ;;  %v2068_v12 = vld [vmem:[#allocation2 + $0x60] sm:$0xff]   ;;  %v2072_v16 = vld [vmem:[#allocation2 + $0x58] sm:$0xff]  }
  0x21   :  { %1954 = vmatprep.subr.bf16.mxu1 %v2061_v5  ;;  %v2069_v13 = vld [vmem:[#allocation2 + $0xe0] sm:$0xff]   ;;  %v2073_v17 = vld [vmem:[#allocation2 + $0xd8] sm:$0xff]   ;;  %v2076_v20 = vld [vmem:[#allocation2 + $0x50] sm:$0xff]  }
  0x22   :  { %v2070_v14 = vld [vmem:[#allocation2 + $0x20] sm:$0xff]   ;;  %v2074_v18 = vld [vmem:[#allocation2 + $0x18] sm:$0xff]   ;;  %v2077_v21 = vld [vmem:[#allocation2 + $0xd0] sm:$0xff]  }
  0x23   :  { %1933 = vmatpush3.bf16.msra.mxu0 %v2062_v6  ;;  %v2071_v15 = vld [vmem:[#allocation2 + $0xa0] sm:$0xff]   ;;  %v2075_v19 = vld [vmem:[#allocation2 + $0x98] sm:$0xff]   ;;  %v2078_v22 = vld [vmem:[#allocation2 + $0x10] sm:$0xff]  }
  0x24   :  { %1955 = vmatpush3.bf16.msra.mxu1 %v2063_v7  ;;  %1934 = vmatprep.subr.bf16.mxu0 %v2064_v8  ;;  %v2079_v23 = vld [vmem:[#allocation2 + $0x90] sm:$0xff]   ;;  %v2080_v24 = vld [vmem:[#allocation2 + $0x48] sm:$0xff]   ;;  %v2084_v28 = vld [vmem:[#allocation2 + $0x40] sm:$0xff]  }
  0x25   :  { %1956 = vmatprep.subr.bf16.mxu1 %v2065_v9  ;;  %v2081_v25 = vld [vmem:[#allocation2 + $0xc8] sm:$0xff]   ;;  %v2085_v29 = vld [vmem:[#allocation2 + $0xc0] sm:$0xff]   ;;  %v2088_v40 = vld [vmem:[#allocation2 + $0x178] sm:$0xff]  }
  0x26   :  { %v2082_v26 = vld [vmem:[#allocation2 + $0x8] sm:$0xff]   ;;  %v2086_v30 = vld [vmem:[#allocation2] sm:$0xff]   ;;  %v2089_v41 = vld [vmem:[#allocation2 + $0x1f8] sm:$0xff]  }
  0x27   :  { %1935 = vmatpush3.bf16.msra.mxu0 %v2066_v10  ;;  %v2083_v27 = vld [vmem:[#allocation2 + $0x88] sm:$0xff]   ;;  %v2087_v31 = vld [vmem:[#allocation2 + $0x80] sm:$0xff]   ;;  %v2090_v42 = vld [vmem:[#allocation2 + $0x138] sm:$0xff]  }
  0x28   :  { %1957 = vmatpush3.bf16.msra.mxu1 %v2067_v11  ;;  %1936 = vmatprep.subr.bf16.mxu0 %v2068_v12  ;;  %v67_v32 = vld [vmem:[%s2470_s0] sm:$0xff]  ;;  %v68_v34 = vld [vmem:[%s2470_s0 + $0x8] sm:$0xff]  ;;  %v2091_v43 = vld [vmem:[#allocation2 + $0x1b8] sm:$0xff]  }
  0x29   :  { %1958 = vmatprep.subr.bf16.mxu1 %v2069_v13  ;;  %v71_v33 = vld [vmem:[%s2470_s0 + $0x20] sm:$0xff]  ;;  %v72_v37 = vld [vmem:[%s2470_s0 + $0x28] sm:$0xff]  ;;  %v2092_v44 = vld [vmem:[#allocation2 + $0x170] sm:$0xff]  }
  0x2a   :  { %v1753_v35 = vcombine.low %v67_v32, %v71_v33  ;;  %v1754_v36 = vcombine.high %v67_v32, %v71_v33  ;;  %v1755_v38 = vcombine.low %v68_v34, %v72_v37  ;;  %v1756_v39 = vcombine.high %v68_v34, %v72_v37  ;;  %v2093_v45 = vld [vmem:[#allocation2 + $0x1f0] sm:$0xff]   ;;  %v2096_v48 = vld [vmem:[#allocation2 + $0x168] sm:$0xff]   ;;  %v2100_v52 = vld [vmem:[#allocation2 + $0x160] sm:$0xff]  }
  0x2b   :  { %1937 = vmatpush3.bf16.msra.mxu0 %v2070_v14  ;;  %v2094_v46 = vld [vmem:[#allocation2 + $0x130] sm:$0xff]   ;;  %v2097_v49 = vld [vmem:[#allocation2 + $0x1e8] sm:$0xff]   ;;  %v2101_v53 = vld [vmem:[#allocation2 + $0x1e0] sm:$0xff]   ;;  %v2206_v32 = vmov 0  }
  0x2c   :  { %1959 = vmatpush3.bf16.msra.mxu1 %v2071_v15  ;;  %1938 = vmatprep.subr.bf16.mxu0 %v2072_v16  ;;  %v2095_v47 = vld [vmem:[#allocation2 + $0x1b0] sm:$0xff]   ;;  %v2098_v50 = vld [vmem:[#allocation2 + $0x128] sm:$0xff]   ;;  %v2102_v54 = vld [vmem:[#allocation2 + $0x120] sm:$0xff]  }
  0x2d   :  { %1960 = vmatprep.subr.bf16.mxu1 %v2073_v17  ;;  %666 = vmatprep.mubr.bf16.mxu0 %v1754_v36  ;;  %v2099_v51 = vld [vmem:[#allocation2 + $0x1a8] sm:$0xff]   ;;  %v2103_v55 = vld [vmem:[#allocation2 + $0x1a0] sm:$0xff]   ;;  %v2104_v56 = vld [vmem:[#allocation2 + $0x158] sm:$0xff]  }
  0x2e   :  { %707 = vmatprep.mubr.bf16.mxu1 %v1756_v39  ;;  %v2105_v57 = vld [vmem:[#allocation2 + $0x1d8] sm:$0xff]   ;;  %v2108_v60 = vld [vmem:[#allocation2 + $0x150] sm:$0xff]   ;;  %v2112_v0 = vld [vmem:[#allocation2 + $0x148] sm:$0xff]  }
  0x2f   :  { %1939 = vmatpush3.bf16.msra.mxu0 %v2074_v18  ;;  %v2106_v58 = vld [vmem:[#allocation2 + $0x118] sm:$0xff]   ;;  %v2109_v61 = vld [vmem:[#allocation2 + $0x1d0] sm:$0xff]   ;;  %v2113_v1 = vld [vmem:[#allocation2 + $0x1c8] sm:$0xff]  }
  0x30   :  { %1961 = vmatpush3.bf16.msra.mxu1 %v2075_v19  ;;  %1940 = vmatprep.subr.bf16.mxu0 %v2076_v20  ;;  %v2107_v59 = vld [vmem:[#allocation2 + $0x198] sm:$0xff]   ;;  %v2110_v62 = vld [vmem:[#allocation2 + $0x110] sm:$0xff]   ;;  %v2114_v2 = vld [vmem:[#allocation2 + $0x108] sm:$0xff]  }
  0x31   :  { %1962 = vmatprep.subr.bf16.mxu1 %v2077_v21  ;;  %v2111_v63 = vld [vmem:[#allocation2 + $0x190] sm:$0xff]   ;;  %v2115_v3 = vld [vmem:[#allocation2 + $0x188] sm:$0xff]   ;;  %v2116_v4 = vld [vmem:[#allocation2 + $0x140] sm:$0xff]  }
  0x32   :  { %v2117_v5 = vld [vmem:[#allocation2 + $0x1c0] sm:$0xff]   ;;  %v69_v8 = vld [vmem:[%s2470_s0 + $0x10] sm:$0xff]  ;;  %v70_v12 = vld [vmem:[%s2470_s0 + $0x18] sm:$0xff] }
  0x33   :  { %1941 = vmatpush3.bf16.msra.mxu0 %v2078_v22  ;;  %v2118_v6 = vld [vmem:[#allocation2 + $0x100] sm:$0xff]   ;;  %v73_v9 = vld [vmem:[%s2470_s0 + $0x30] sm:$0xff]  ;;  %v74_v13 = vld [vmem:[%s2470_s0 + $0x38] sm:$0xff] }
  0x34   :  { %1963 = vmatpush3.bf16.msra.mxu1 %v2079_v23  ;;  %1942 = vmatprep.subr.bf16.mxu0 %v2080_v24  ;;  %v2119_v7 = vld [vmem:[#allocation2 + $0x180] sm:$0xff]   ;;  %v1757_v10 = vcombine.low %v69_v8, %v73_v9  ;;  %v1758_v11 = vcombine.high %v69_v8, %v73_v9  ;;  %v1759_v14 = vcombine.low %v70_v12, %v74_v13  ;;  %v2120_v16 = vld [vmem:[%s2473_s3 + $0x70] ss:$8 sps:$4 sm:$0xff]   ;;  %v2122_v17 = vld [vmem:[%s2473_s3 + $0x74] ss:$8 sps:$4 sm:$0xff]  }
  0x35   :  { %1964 = vmatprep.subr.bf16.mxu1 %v2081_v25  ;;  %v1760_v15 = vcombine.high %v70_v12, %v74_v13  ;;  %v2125_v18 = vld [vmem:[%s2473_s3 + $0x64] ss:$8 sps:$4 sm:$0xff]   ;;  %v2123_v19 = vld [vmem:[%s2473_s3 + $0x60] ss:$8 sps:$4 sm:$0xff]   ;;  %v2128_v20 = vld [vmem:[%s2473_s3 + $0x54] ss:$8 sps:$4 sm:$0xff]  }
  0x36   :  { %v2126_v21 = vld [vmem:[%s2473_s3 + $0x50] ss:$8 sps:$4 sm:$0xff]   ;;  %v2131_v22 = vld [vmem:[%s2473_s3 + $0x44] ss:$8 sps:$4 sm:$0xff]   ;;  %v2129_v23 = vld [vmem:[%s2473_s3 + $0x40] ss:$8 sps:$4 sm:$0xff]  }
  0x37   :  { %1943 = vmatpush3.bf16.msra.mxu0 %v2082_v26  ;;  %v2134_v24 = vld [vmem:[%s2473_s3 + $0x34] ss:$8 sps:$4 sm:$0xff]   ;;  %v2132_v25 = vld [vmem:[%s2473_s3 + $0x30] ss:$8 sps:$4 sm:$0xff]   ;;  %v2137_v26 = vld [vmem:[%s2473_s3 + $0x24] ss:$8 sps:$4 sm:$0xff]  }
  0x38   :  { %1965 = vmatpush3.bf16.msra.mxu1 %v2083_v27  ;;  %1944 = vmatprep.subr.bf16.mxu0 %v2084_v28  ;;  %v2135_v27 = vld [vmem:[%s2473_s3 + $0x20] ss:$8 sps:$4 sm:$0xff]   ;;  %v2140_v28 = vld [vmem:[%s2473_s3 + $0x14] ss:$8 sps:$4 sm:$0xff]  }
  0x39   :  { %1966 = vmatprep.subr.bf16.mxu1 %v2085_v29  ;;  %v2138_v29 = vld [vmem:[%s2473_s3 + $0x10] ss:$8 sps:$4 sm:$0xff]   ;;  %v2146_v8 = vld [vmem:[%s2476_s6 + $0x28] sm:$0xff]   ;;  %v2147_v9 = vld [vmem:[%s2476_s6 + $0x20] sm:$0xff]  }
  0x3a   :  { %v2150_v12 = vld [vmem:[%s2476_s6 + $0x8] sm:$0xff]   ;;  %v2151_v13 = vld [vmem:[%s2476_s6] sm:$0xff]  }
  0x3b   :  { %1945 = vmatpush3.bf16.msra.mxu0 %v2086_v30  ;;  %v2143_v30 = vld [vmem:[%s2473_s3 + $0x4] ss:$8 sps:$4 sm:$0xff]  }
  0x3c   :  { %1967 = vmatpush3.bf16.msra.mxu1 %v2087_v31  ;;  %1974 = vmatprep.subr.bf16.mxu0 %v2088_v40  ;;  %v2141_v31 = vld [vmem:[%s2473_s3] ss:$8 sps:$4 sm:$0xff]  }
  0x3d   :  { %1996 = vmatprep.subr.bf16.mxu1 %v2089_v41  ;;  %v1752_v40 = vld [vmem:[%s2472_s2] ss:$0 sm:$0xff] }
  0x3e   :  { %667 = vmatmul.mubr.bf16.vlgmr.msra.gmra.mxu0 %v1753_v35 }
  0x3f   :  { %708 = vmatmul.mubr.bf16.vlgmr.msra.gmra.mxu1 %v1755_v38  ;;  %1975 = vmatpush3.bf16.msra.mxu0 %v2090_v42 }
  0x40   :  { %1997 = vmatpush3.bf16.msra.mxu1 %v2091_v43  ;;  %1976 = vmatprep.subr.bf16.mxu0 %v2092_v44 }
  0x41   :  { %1998 = vmatprep.subr.bf16.mxu1 %v2093_v45  ;;  %748 = vmatprep.mubr.bf16.mxu0 %v1758_v11  ;;  %v2149_v11 = vld [vmem:[%s2476_s6 + $0x10] sm:$0xff]  }
  0x42   :  { %789 = vmatprep.mubr.bf16.mxu1 %v1760_v15  ;;  %v1140_v15 = vld [vmem:[#allocation4 + $0x1e0] sm:$0xff] }
  0x43   :  { %1977 = vmatpush3.bf16.msra.mxu0 %v2094_v46 }
  0x44   :  { %1999 = vmatpush3.bf16.msra.mxu1 %v2095_v47  ;;  %1978 = vmatprep.subr.bf16.mxu0 %v2096_v48 }
  0x45   :  { %2000 = vmatprep.subr.bf16.mxu1 %v2097_v49 }
  0x47   :  { %1979 = vmatpush3.bf16.msra.mxu0 %v2098_v50 }
  0x48   :  { %2001 = vmatpush3.bf16.msra.mxu1 %v2099_v51  ;;  %1980 = vmatprep.subr.bf16.mxu0 %v2100_v52 }
  0x49   :  { %2002 = vmatprep.subr.bf16.mxu1 %v2101_v53 }
  0x4b   :  { %1981 = vmatpush3.bf16.msra.mxu0 %v2102_v54 }
  0x4c   :  { %2003 = vmatpush3.bf16.msra.mxu1 %v2103_v55  ;;  %1982 = vmatprep.subr.bf16.mxu0 %v2104_v56 }
  0x4d   :  { %2004 = vmatprep.subr.bf16.mxu1 %v2105_v57 }
  0x4f   :  { %1983 = vmatpush3.bf16.msra.mxu0 %v2106_v58 }
  0x50   :  { %2005 = vmatpush3.bf16.msra.mxu1 %v2107_v59  ;;  %1984 = vmatprep.subr.bf16.mxu0 %v2108_v60 }
  0x51   :  { %2006 = vmatprep.subr.bf16.mxu1 %v2109_v61 }
  0x53   :  { %1985 = vmatpush3.bf16.msra.mxu0 %v2110_v62 }
  0x54   :  { %2007 = vmatpush3.bf16.msra.mxu1 %v2111_v63  ;;  %1986 = vmatprep.subr.bf16.mxu0 %v2112_v0 }
  0x55   :  { %2008 = vmatprep.subr.bf16.mxu1 %v2113_v1 }
  0x57   :  { %1987 = vmatpush3.bf16.msra.mxu0 %v2114_v2 }
  0x58   :  { %2009 = vmatpush3.bf16.msra.mxu1 %v2115_v3  ;;  %1988 = vmatprep.subr.bf16.mxu0 %v2116_v4 }
  0x59   :  { %2010 = vmatprep.subr.bf16.mxu1 %v2117_v5  ;;  %v2144_v5 = vld [vmem:[%s2476_s6 + $0x38] sm:$0xff]  }
  0x5b   :  { %1989 = vmatpush3.bf16.msra.mxu0 %v2118_v6  ;;  %v2207_v6 = vmov 0.0  }
  0x5c   :  { %2011 = vmatpush3.bf16.msra.mxu1 %v2119_v7  ;;  %909 = vmatprep.subr.bf16.mxu0 %v2122_v17  ;;  %v2145_v7 = vld [vmem:[%s2476_s6 + $0x30] sm:$0xff]  }
  0x5d   :  { %2027 = vmatprep.subr.bf16.mxu1 %v2207_v6 }
  0x5e   :  { %749 = vmatmul.mubr.bf16.vlgmr.msra.gmra.mxu0 %v1757_v10  ;;  %v2148_v10 = vld [vmem:[%s2476_s6 + $0x18] sm:$0xff]  }
  0x5f   :  { %790 = vmatmul.mubr.bf16.vlgmr.msra.gmra.mxu1 %v1759_v14  ;;  %910 = vmatpush1.bf16.msra.mxu0 %v2120_v16  ;;  %v1136_v14 = vld [vmem:[#allocation4 + $0x1c0] sm:$0xff]  ;;  %v2381_v16 = vld [vmem:[#allocation4 + $0x1c8] sm:$0xff] }
  0x60   :  { %911 = vmatprep.subr.bf16.mxu0 %v2125_v18  ;;  %941 = vmatprep.mubr.bf16.mxu0 %v2206_v32  ;;  %v1906_v17 = vcombine.low %v1136_v14, %v1140_v15  ;;  %v1907_v18 = vcombine.high %v1136_v14, %v1140_v15  ;;  %v1113_v14 = vld [vmem:[#allocation4 + $0x108] sm:$0xff] }
  0x61   :  { %2028 = vmatpush3.bf16.msra.mxu1 %v2144_v5  ;;  %2043 = vmatprep.mubr.msk.bf16.mxu1 %vm2208_vm0, %v2207_v6  ;;  %v1133_v5 = vld [vmem:[#allocation4 + $0x1a8] sm:$0xff] }
  0x62   :  { %2029 = vmatprep.subr.bf16.mxu1 %v2207_v6  ;;  %v1117_v15 = vld [vmem:[#allocation4 + $0x128] sm:$0xff] }
  0x63   :  { %912 = vmatpush1.bf16.msra.mxu0 %v2123_v19  ;;  %v2383_v19 = vld [vmem:[#allocation4 + $0x1e8] sm:$0xff] }
  0x64   :  { %913 = vmatprep.subr.bf16.mxu0 %v2128_v20  ;;  %v1128_v20 = vld [vmem:[#allocation4 + $0x180] sm:$0xff] }
  0x65   :  { %2030 = vmatpush3.bf16.msra.mxu1 %v2145_v7 }
  0x66   :  { %2031 = vmatprep.subr.bf16.mxu1 %v2207_v6 }
  0x67   :  { %914 = vmatpush1.bf16.msra.mxu0 %v2126_v21  ;;  %v1132_v21 = vld [vmem:[#allocation4 + $0x1a0] sm:$0xff] }
  0x68   :  { %915 = vmatprep.subr.bf16.mxu0 %v2131_v22  ;;  %v1908_v22 = vcombine.low %v2381_v16, %v2383_v19 }
  0x69   :  { %2032 = vmatpush3.bf16.msra.mxu1 %v2146_v8 }
  0x6a   :  { %2033 = vmatprep.subr.bf16.mxu1 %v2207_v6 }
  0x6b   :  { %916 = vmatpush1.bf16.msra.mxu0 %v2129_v23  ;;  %v1909_v23 = vcombine.high %v2381_v16, %v2383_v19  ;;  %v1101_v16 = vld [vmem:[#allocation4 + $0xa8] sm:$0xff] }
  0x6c   :  { %917 = vmatprep.subr.bf16.mxu0 %v2134_v24  ;;  %v1899_v24 = vcombine.high %v1128_v20, %v1132_v21 }
  0x6d   :  { %2034 = vmatpush3.bf16.msra.mxu1 %v2147_v9 }
  0x6e   :  { %2035 = vmatprep.subr.bf16.mxu1 %v2207_v6 }
  0x6f   :  { %918 = vmatpush1.bf16.msra.mxu0 %v2132_v25  ;;  %v1898_v25 = vcombine.low %v1128_v20, %v1132_v21  ;;  %v1105_v20 = vld [vmem:[#allocation4 + $0xc8] sm:$0xff] }
  0x70   :  { %919 = vmatprep.subr.bf16.mxu0 %v2137_v26  ;;  %v1120_v26 = vld [vmem:[#allocation4 + $0x140] sm:$0xff]  ;;  %v1109_v21 = vld [vmem:[#allocation4 + $0xe8] sm:$0xff] }
  0x71   :  { %2036 = vmatpush3.bf16.msra.mxu1 %v2148_v10  ;;  %v1121_v10 = vld [vmem:[#allocation4 + $0x148] sm:$0xff]  ;;  %v1876_v19 = vcombine.low %v1105_v20, %v1109_v21 }
  0x72   :  { %2037 = vmatprep.subr.bf16.mxu1 %v2207_v6 }
  0x73   :  { %920 = vmatpush1.bf16.msra.mxu0 %v2135_v27  ;;  %v1124_v27 = vld [vmem:[#allocation4 + $0x160] sm:$0xff] }
  0x74   :  { %921 = vmatprep.subr.bf16.mxu0 %v2140_v28  ;;  %v1891_v28 = vcombine.high %v1120_v26, %v1124_v27 }
  0x75   :  { %2038 = vmatpush3.bf16.msra.mxu1 %v2149_v11  ;;  %v1125_v11 = vld [vmem:[#allocation4 + $0x168] sm:$0xff] }
  0x76   :  { %2039 = vmatprep.subr.bf16.mxu1 %v2207_v6 }
  0x77   :  { %922 = vmatpush1.bf16.msra.mxu0 %v2138_v29  ;;  %v1890_v29 = vcombine.low %v1120_v26, %v1124_v27  ;;  %v1088_v27 = vld [vmem:[#allocation4 + $0x40] sm:$0xff] }
  0x78   :  { %923 = vmatprep.subr.bf16.mxu0 %v2143_v30  ;;  %v1112_v30 = vld [vmem:[#allocation4 + $0x100] sm:$0xff] }
  0x79   :  { %2040 = vmatpush3.bf16.msra.mxu1 %v2150_v12 }
  0x7a   :  { %2041 = vmatprep.subr.bf16.mxu1 %v2207_v6 }
  0x7b   :  { %924 = vmatpush1.bf16.msra.mxu0 %v2141_v31  ;;  %v1116_v31 = vld [vmem:[#allocation4 + $0x120] sm:$0xff] }
  0x7c   :  { %1506 = vmatprep.subr.bf16.mxu0 %v1907_v18  ;;  %v1885_v18 = vcombine.high %v1113_v14, %v1117_v15 }
  0x7d   :  { %2042 = vmatpush3.bf16.msra.mxu1 %v2151_v13  ;;  %v1893_v13 = vcombine.high %v1121_v10, %v1125_v11 }
  0x7e   :  { %1549 = vmatprep.subr.bf16.mxu1 %v1909_v23  ;;  %v1884_v23 = vcombine.low %v1113_v14, %v1117_v15  ;;  %v1114_v15 = vld [vmem:[#allocation4 + $0x110] sm:$0xff] }
  0xfe   :  { %v1946_v33 = vpop.f32.mrf.mxu0 }
  0xff   :  { %v1968_v34 = vpop.f32.mrf.mxu1 }
 0x100   :  { %v1947_v35 = vpop.f32.mrf.mxu0 }
 0x101   :  { %v1969_v36 = vpop.f32.mrf.mxu1  ;;  %v1948_v38 = vadd.f32 %v1947_v35, %v1946_v33  ;;  %v1883_v33 = vcombine.high %v1112_v30, %v1116_v31  ;;  %v1104_v35 = vld [vmem:[#allocation4 + $0xc0] sm:$0xff] }
 0x102   :  { %v1949_v37 = vpop.f32.mrf.mxu0  ;;  %v1970_v43 = vadd.f32 %v1969_v36, %v1968_v34  ;;  %v1882_v34 = vcombine.low %v1112_v30, %v1116_v31  ;;  %v1108_v36 = vld [vmem:[#allocation4 + $0xe0] sm:$0xff]  ;;  %v1093_v31 = vld [vmem:[#allocation4 + $0x68] sm:$0xff] }
 0x103   :  { %v1971_v39 = vpop.f32.mrf.mxu1  ;;  %v669_v42 = vadd.f32 %v1948_v38, %v1752_v40  ;;  %v1874_v38 = vcombine.low %v1104_v35, %v1108_v36 }
 0x104   :  { %v1950_v41 = vpop.f32.mrf.mxu0 }
 0x105   :  { %v1951_v44 = vadd.f32 %v1950_v41, %v1949_v37  ;;  %v1972_v45 = vpop.f32.mrf.mxu1  ;;  %v710_v49 = vadd.f32 %v1970_v43, %v669_v42  ;;  %v1875_v37 = vcombine.high %v1104_v35, %v1108_v36  ;;  %v819_v43 = vlaneseq  ;;  %v1080_v36 = vld [vmem:[#allocation4] sm:$0xff] }
 0x106   :  { %v1973_v54 = vadd.f32 %v1972_v45, %v1971_v39  ;;  %v1096_v39 = vld [vmem:[#allocation4 + $0x80] sm:$0xff] }
 0x107   :  { %v672_v50 = vadd.f32 %v1951_v44, %v1752_v40  ;;  %v1100_v40 = vld [vmem:[#allocation4 + $0xa0] sm:$0xff]  ;;  %v2389_v44 = vshrl.u32 %v819_v43, 7 }
 0x108   :  { %v1867_v41 = vcombine.high %v1096_v39, %v1100_v40  ;;  %v1866_v42 = vcombine.low %v1096_v39, %v1100_v40  ;;  %v1085_v40 = vld [vmem:[#allocation4 + $0x28] sm:$0xff] }
 0x109   :  { %v713_v58 = vadd.f32 %v1973_v54, %v672_v50  ;;  %v821_v45 = vsub.s32 0, %v2389_v44 }
 0x11e   :  { %v1990_v46 = vpop.f32.mrf.mxu0 }
 0x11f   :  { %v2012_v47 = vpop.f32.mrf.mxu1 }
 0x120   :  { %v1991_v48 = vpop.f32.mrf.mxu0 }
 0x121   :  { %v1992_v51 = vadd.f32 %v1991_v48, %v1990_v46  ;;  %v2013_v52 = vpop.f32.mrf.mxu1  ;;  %v817_v46 = vld [vmem:[%s2474_s4] sm:$0x3] }
 0x122   :  { %v1993_v53 = vpop.f32.mrf.mxu0  ;;  %v2014_v59 = vadd.f32 %v2013_v52, %v2012_v47  ;;  %v825_v47 = vsub.s32 1, %v2389_v44  ;;  %v822_v48 = vrot.slane %v817_v46, %v821_v45 }
 0x123   :  { %v751_v55 = vadd.f32 %v1992_v51, %v710_v49  ;;  %v2015_v56 = vpop.f32.mrf.mxu1 }
 0x124   :  { %v1994_v57 = vpop.f32.mrf.mxu0  ;;  %v826_v49 = vrot.slane %v817_v46, %v825_v47  ;;  %v1138_v46 = vld [vmem:[#allocation4 + $0x1d0] sm:$0xff] }
 0x125   :  { %v1995_v60 = vadd.f32 %v1994_v57, %v1993_v53  ;;  %v2016_v61 = vpop.f32.mrf.mxu1  ;;  %v792_v62 = vadd.f32 %v2014_v59, %v751_v55 }
 0x126   :  { %v2017_v0 = vadd.f32 %v2016_v61, %v2015_v56 }
 0x127   :  { %v754_v63 = vadd.f32 %v1995_v60, %v713_v58  ;;  %v798_v2 = vmax.f32 %v792_v62, 0.0 }
 0x129   :  { %v795_v1 = vadd.f32 %v2017_v0, %v754_v63  ;;  %v958_v63 = vld [vmem:[%s2475_s5] sm:$0xff]  ;;  %v959_v0 = vld [vmem:[%s2475_s5 + $0x8] sm:$0xff] }
 0x12b   :  { %v799_v3 = vmax.f32 %v795_v1, 0.0 }
 0x12d   :  { %v800_v4 = vpack.c.bf16 %v799_v3, %v798_v2 }
 0x12f   :  { %942 = vmatmul.mubr.bf16.vlgmr.msra.gmra.mxu0 %v800_v4  ;;  %v1129_v4 = vld [vmem:[#allocation4 + $0x188] sm:$0xff] }
 0x130   :  { %1538 = vmatprep.mubr.bf16.mxu0 %v2206_v32  ;;  %1507 = vmatpush1.bf16.msra.mxu0 %v1906_v17  ;;  %v1901_v9 = vcombine.high %v1129_v4, %v1133_v5  ;;  %v1900_v12 = vcombine.low %v1129_v4, %v1133_v5  ;;  %v1892_v17 = vcombine.low %v1121_v10, %v1125_v11  ;;  %v1127_v10 = vld [vmem:[#allocation4 + $0x178] sm:$0xff] }
 0x131   :  { %1508 = vmatprep.subr.bf16.mxu0 %v1899_v24  ;;  %v1877_v24 = vcombine.high %v1105_v20, %v1109_v21  ;;  %v1119_v20 = vld [vmem:[#allocation4 + $0x138] sm:$0xff] }
 0x134   :  { %1509 = vmatpush1.bf16.msra.mxu0 %v1898_v25  ;;  %v1097_v25 = vld [vmem:[#allocation4 + $0x88] sm:$0xff] }
 0x135   :  { %1510 = vmatprep.subr.bf16.mxu0 %v1891_v28  ;;  %v1868_v26 = vcombine.low %v1097_v25, %v1101_v16  ;;  %v1092_v28 = vld [vmem:[#allocation4 + $0x60] sm:$0xff] }
 0x136   :  { %v1859_v30 = vcombine.high %v1088_v27, %v1092_v28 }
 0x138   :  { %1511 = vmatpush1.bf16.msra.mxu0 %v1890_v29  ;;  %v1089_v29 = vld [vmem:[#allocation4 + $0x48] sm:$0xff] }
 0x139   :  { %1512 = vmatprep.subr.bf16.mxu0 %v1883_v33  ;;  %v1858_v33 = vcombine.low %v1088_v27, %v1092_v28  ;;  %v1861_v35 = vcombine.high %v1089_v29, %v1093_v31 }
 0x13c   :  { %1513 = vmatpush1.bf16.msra.mxu0 %v1882_v34  ;;  %v1860_v34 = vcombine.low %v1089_v29, %v1093_v31  ;;  %v1102_v31 = vld [vmem:[#allocation4 + $0xb0] sm:$0xff] }
 0x13d   :  { %1514 = vmatprep.subr.bf16.mxu0 %v1875_v37  ;;  %v1084_v37 = vld [vmem:[#allocation4 + $0x20] sm:$0xff] }
 0x13e   :  { %v1851_v39 = vcombine.high %v1080_v36, %v1084_v37 }
 0x140   :  { %1515 = vmatpush1.bf16.msra.mxu0 %v1874_v38  ;;  %v1081_v38 = vld [vmem:[#allocation4 + $0x8] sm:$0xff] }
 0x141   :  { %1516 = vmatprep.subr.bf16.mxu0 %v1867_v41  ;;  %v1850_v41 = vcombine.low %v1080_v36, %v1084_v37  ;;  %v1853_v43 = vcombine.high %v1081_v38, %v1085_v40 }
 0x144   :  { %1517 = vmatpush1.bf16.msra.mxu0 %v1866_v42  ;;  %v1852_v42 = vcombine.low %v1081_v38, %v1085_v40  ;;  %v1094_v40 = vld [vmem:[#allocation4 + $0x70] sm:$0xff] }
 0x145   :  { %1518 = vmatprep.subr.bf16.mxu0 %v1859_v30  ;;  %v1098_v30 = vld [vmem:[#allocation4 + $0x90] sm:$0xff] }
 0x146   :  { %v1871_v37 = vcombine.high %v1098_v30, %v1102_v31 }
 0x148   :  { %1519 = vmatpush1.bf16.msra.mxu0 %v1858_v33  ;;  %v1099_v33 = vld [vmem:[#allocation4 + $0x98] sm:$0xff] }
 0x149   :  { %1520 = vmatprep.subr.bf16.mxu0 %v1851_v39  ;;  %v1090_v39 = vld [vmem:[#allocation4 + $0x50] sm:$0xff] }
 0x14c   :  { %1521 = vmatpush1.bf16.msra.mxu0 %v1850_v41  ;;  %v1091_v41 = vld [vmem:[#allocation4 + $0x58] sm:$0xff] }
 0x1ef   :  { %v943_v50 = vpop.f32.mrf.mxu0 }
 0x1f0   :  { %v944_v51 = vadd.f32 %v943_v50, %v822_v48 }
 0x1f1   :  { %v945_v52 = vpop.f32.mrf.mxu0 }
 0x1f2   :  { %1734 = vst [vmem:[%s2481_s11] sm:$0xff] %v944_v51  ;;  %v946_v53 = vadd.f32 %v945_v52, %v826_v49  ;;  %v1143_v52 = vld [vmem:[#allocation4 + $0x1f8] sm:$0xff] }
 0x1f3   :  { %v947_v54 = vpop.f32.mrf.mxu0 }
 0x1f4   :  { %v952_v55 = vmul.f32 0.5, %v946_v53  ;;  %1736 = vst [vmem:[%s2482_s12] sm:$0xff] %v946_v53  ;;  %v948_v56 = vadd.f32 %v947_v54, %v822_v48  ;;  %v1142_v48 = vld [vmem:[#allocation4 + $0x1f0] sm:$0xff] }
 0x1f5   :  { %v949_v57 = vpop.f32.mrf.mxu0  ;;  %v1910_v50 = vcombine.low %v1138_v46, %v1142_v48 }
 0x1f6   :  { %v954_v58 = vmul.f32 1.442695, %v952_v55  ;;  %1735 = vst [vmem:[%s2481_s11 + $0x8] sm:$0xff] %v948_v56  ;;  %v950_v59 = vadd.f32 %v949_v57, %v826_v49  ;;  %v1139_v49 = vld [vmem:[#allocation4 + $0x1d8] sm:$0xff]  ;;  %v1841_v55 = vld [vmem:[%s2477_s7] ss:$0 sm:$0xff] }
 0x1f7   :  { %v1912_v53 = vcombine.low %v1139_v49, %v1143_v52  ;;  %v1913_v54 = vcombine.high %v1139_v49, %v1143_v52  ;;  %v1083_v52 = vld [vmem:[#allocation4 + $0x18] sm:$0xff] }
 0x1f8   :  { %2152 = vpow2.f32 %v954_v58  ;;  %v953_v60 = vmul.f32 0.5, %v950_v59  ;;  %1737 = vst [vmem:[%s2482_s12 + $0x8] sm:$0xff] %v950_v59 }
 0x1fa   :  { %v956_v61 = vmul.f32 1.442695, %v953_v60 }
 0x1fc   :  { %2154 = vpow2.f32 %v956_v61  ;;  %v1130_v61 = vld [vmem:[#allocation4 + $0x190] sm:$0xff] }
 0x205   :  { %v2153_v62 = vpop.eup %2152 }
 0x206   :  { %v960_v1 = vmul.f32 %v2153_v62, %v958_v63  ;;  %v1134_v63 = vld [vmem:[#allocation4 + $0x1b0] sm:$0xff] }
 0x207   :  { %v1903_v5 = vcombine.high %v1130_v61, %v1134_v63  ;;  %v1902_v11 = vcombine.low %v1130_v61, %v1134_v63  ;;  %v1160_v61 = vsub.s32 3, %v2389_v44 }
 0x208   :  { %v962_v6 = vadd.f32 %v960_v1, %v944_v51  ;;  %v1911_v51 = vcombine.high %v1138_v46, %v1142_v48  ;;  %v1135_v1 = vld [vmem:[#allocation4 + $0x1b8] sm:$0xff]  ;;  %v1863_v48 = vcombine.high %v1090_v39, %v1094_v40 }
 0x209   :  { %v2155_v2 = vpop.eup %2154 }
 0x20a   :  { %v961_v3 = vmul.f32 %v2155_v2, %v959_v0  ;;  %1592 = vmatprep.subr.bf16.mxu0 %v1911_v51  ;;  %v1131_v0 = vld [vmem:[#allocation4 + $0x198] sm:$0xff]  ;;  %v1086_v51 = vld [vmem:[#allocation4 + $0x30] sm:$0xff] }
 0x20c   :  { %v963_v7 = vadd.f32 %v961_v3, %v948_v56 }
 0x20e   :  { %v964_v8 = vpack.c.bf16 %v963_v7, %v962_v6  ;;  %v1905_v6 = vcombine.high %v1131_v0, %v1135_v1  ;;  %v1122_v7 = vld [vmem:[#allocation4 + $0x150] sm:$0xff] }
 0x210   :  { %2044 = vmatmul.mubr.bf16.vlgmr.msra.gmra.mxu1 %v964_v8  ;;  %v1126_v8 = vld [vmem:[#allocation4 + $0x170] sm:$0xff] }
 0x211   :  { %1550 = vmatpush1.bf16.msra.mxu1 %v1908_v22  ;;  %1581 = vmatprep.mubr.bf16.mxu1 %v2206_v32  ;;  %v1869_v22 = vcombine.high %v1097_v25, %v1101_v16  ;;  %v1894_v21 = vcombine.low %v1122_v7, %v1126_v8  ;;  %v1106_v16 = vld [vmem:[#allocation4 + $0xd0] sm:$0xff] }
 0x212   :  { %1551 = vmatprep.subr.bf16.mxu1 %v1901_v9  ;;  %v1123_v9 = vld [vmem:[#allocation4 + $0x158] sm:$0xff] }
 0x213   :  { %v1897_v14 = vcombine.high %v1123_v9, %v1127_v10 }
 0x215   :  { %1552 = vmatpush1.bf16.msra.mxu1 %v1900_v12  ;;  %v1904_v12 = vcombine.low %v1131_v0, %v1135_v1 }
 0x216   :  { %1553 = vmatprep.subr.bf16.mxu1 %v1893_v13  ;;  %v1895_v13 = vcombine.high %v1122_v7, %v1126_v8 }
 0x219   :  { %1554 = vmatpush1.bf16.msra.mxu1 %v1892_v17  ;;  %v1118_v17 = vld [vmem:[#allocation4 + $0x130] sm:$0xff] }
 0x21a   :  { %1555 = vmatprep.subr.bf16.mxu1 %v1885_v18  ;;  %v1115_v18 = vld [vmem:[#allocation4 + $0x118] sm:$0xff]  ;;  %v1886_v27 = vcombine.low %v1114_v15, %v1118_v17 }
 0x21b   :  { %v1889_v25 = vcombine.high %v1115_v18, %v1119_v20  ;;  %v1888_v28 = vcombine.low %v1115_v18, %v1119_v20 }
 0x21d   :  { %1556 = vmatpush1.bf16.msra.mxu1 %v1884_v23  ;;  %v1896_v23 = vcombine.low %v1123_v9, %v1127_v10 }
 0x21e   :  { %1557 = vmatprep.subr.bf16.mxu1 %v1877_v24  ;;  %v1887_v24 = vcombine.high %v1114_v15, %v1118_v17 }
 0x221   :  { %1558 = vmatpush1.bf16.msra.mxu1 %v1876_v19  ;;  %v1110_v19 = vld [vmem:[#allocation4 + $0xf0] sm:$0xff] }
 0x222   :  { %1559 = vmatprep.subr.bf16.mxu1 %v1869_v22  ;;  %v1107_v22 = vld [vmem:[#allocation4 + $0xd8] sm:$0xff]  ;;  %v1879_v29 = vcombine.high %v1106_v16, %v1110_v19 }
 0x225   :  { %1560 = vmatpush1.bf16.msra.mxu1 %v1868_v26  ;;  %v1111_v26 = vld [vmem:[#allocation4 + $0xf8] sm:$0xff] }
 0x226   :  { %1561 = vmatprep.subr.bf16.mxu1 %v1861_v35  ;;  %v1878_v35 = vcombine.low %v1106_v16, %v1110_v19  ;;  %v1880_v36 = vcombine.low %v1107_v22, %v1111_v26  ;;  %v1168_v16 = vsub.s32 5, %v2389_v44  ;;  %v1176_v19 = vsub.s32 7, %v2389_v44 }
 0x229   :  { %1562 = vmatpush1.bf16.msra.mxu1 %v1860_v34  ;;  %v1103_v34 = vld [vmem:[#allocation4 + $0xb8] sm:$0xff] }
 0x22a   :  { %1563 = vmatprep.subr.bf16.mxu1 %v1853_v43  ;;  %v1873_v38 = vcombine.high %v1099_v33, %v1103_v34  ;;  %v1870_v43 = vcombine.low %v1098_v30, %v1102_v31  ;;  %v1872_v46 = vcombine.low %v1099_v33, %v1103_v34 }
 0x22d   :  { %1564 = vmatpush1.bf16.msra.mxu1 %v1852_v42  ;;  %v1095_v42 = vld [vmem:[#allocation4 + $0x78] sm:$0xff] }
 0x22e   :  { %1635 = vmatprep.subr.bf16.mxu1 %v1913_v54  ;;  %v1865_v49 = vcombine.high %v1091_v41, %v1095_v42  ;;  %v1862_v54 = vcombine.low %v1090_v39, %v1094_v40 }
 0x2d0   :  { %v1070_v56 = vpop.f32.mrf.mxu1 }
 0x2d1   :  { %v1071_v58 = vadd.f32 %v1841_v55, %v1070_v56 }
 0x2d2   :  { %v2045_v57 = vpop.f32.mrf.mxu1 }
 0x2d3   :  { %v1077_v2 = vmax.f32 %v1071_v58, 0.0 }
 0x2d4   :  { %v1073_v59 = vpop.f32.mrf.mxu1 }
 0x2d5   :  { %v1074_v60 = vadd.f32 %v1841_v55, %v1073_v59  ;;  %v1864_v55 = vcombine.low %v1091_v41, %v1095_v42 }
 0x2d6   :  { %v2046_v62 = vpop.f32.mrf.mxu1 }
 0x2d7   :  { %v1078_v3 = vmax.f32 %v1074_v60, 0.0  ;;  %v1156_v60 = vsub.s32 2, %v2389_v44  ;;  %v1144_v62 = vld [vmem:[%s2479_s9] sm:$0xff] }
 0x2d8   :  { %v1149_v63 = vrot.slane %v1144_v62, %v821_v45  ;;  %v1153_v1 = vrot.slane %v1144_v62, %v825_v47 }
 0x2d9   :  { %v2425_v4 = vpack.c.bf16 %v1078_v3, %v1077_v2  ;;  %v1157_v0 = vrot.slane %v1144_v62, %v1156_v60  ;;  %v1161_v2 = vrot.slane %v1144_v62, %v1160_v61 }
 0x2db   :  { %1539 = vmatmul.mubr.bf16.vlgmr.msra.gmra.mxu0 %v2425_v4  ;;  %1582 = vmatmul.mubr.bf16.vlgmr.msra.gmra.mxu1 %v2425_v4 }
 0x2dc   :  { %1593 = vmatpush1.bf16.msra.mxu0 %v1910_v50  ;;  %1636 = vmatpush1.bf16.msra.mxu1 %v1912_v53  ;;  %v1082_v50 = vld [vmem:[#allocation4 + $0x10] sm:$0xff]  ;;  %v1087_v53 = vld [vmem:[#allocation4 + $0x38] sm:$0xff] }
 0x2dd   :  { %1594 = vmatprep.subr.bf16.mxu0 %v1903_v5  ;;  %1637 = vmatprep.subr.bf16.mxu1 %v1905_v6  ;;  %v1855_v56 = vcombine.high %v1082_v50, %v1086_v51  ;;  %v1857_v57 = vcombine.high %v1083_v52, %v1087_v53  ;;  %v1854_v58 = vcombine.low %v1082_v50, %v1086_v51 }
 0x2de   :  { %1624 = vmatprep.mubr.bf16.mxu0 %v2206_v32  ;;  %1667 = vmatprep.mubr.bf16.mxu1 %v2206_v32  ;;  %v1881_v32 = vcombine.high %v1107_v22, %v1111_v26  ;;  %v1856_v59 = vcombine.low %v1083_v52, %v1087_v53 }
 0x2e0   :  { %1595 = vmatpush1.bf16.msra.mxu0 %v1902_v11  ;;  %1638 = vmatpush1.bf16.msra.mxu1 %v1904_v12 }
 0x2e1   :  { %1596 = vmatprep.subr.bf16.mxu0 %v1895_v13  ;;  %1639 = vmatprep.subr.bf16.mxu1 %v1897_v14 }
 0x2e4   :  { %1597 = vmatpush1.bf16.msra.mxu0 %v1894_v21  ;;  %1640 = vmatpush1.bf16.msra.mxu1 %v1896_v23 }
 0x2e5   :  { %1598 = vmatprep.subr.bf16.mxu0 %v1887_v24  ;;  %1641 = vmatprep.subr.bf16.mxu1 %v1889_v25  ;;  %v1164_v24 = vsub.s32 4, %v2389_v44  ;;  %v1172_v25 = vsub.s32 6, %v2389_v44 }
 0x2e7   :  { %v1165_v22 = vrot.slane %v1144_v62, %v1164_v24  ;;  %v1173_v26 = vrot.slane %v1144_v62, %v1172_v25 }
 0x2e8   :  { %1599 = vmatpush1.bf16.msra.mxu0 %v1886_v27  ;;  %1642 = vmatpush1.bf16.msra.mxu1 %v1888_v28  ;;  %v1169_v27 = vrot.slane %v1144_v62, %v1168_v16  ;;  %v1177_v28 = vrot.slane %v1144_v62, %v1176_v19 }
 0x2e9   :  { %1600 = vmatprep.subr.bf16.mxu0 %v1879_v29  ;;  %1643 = vmatprep.subr.bf16.mxu1 %v1881_v32 }
 0x2ec   :  { %1601 = vmatpush1.bf16.msra.mxu0 %v1878_v35  ;;  %1644 = vmatpush1.bf16.msra.mxu1 %v1880_v36 }
 0x2ed   :  { %1602 = vmatprep.subr.bf16.mxu0 %v1871_v37  ;;  %1645 = vmatprep.subr.bf16.mxu1 %v1873_v38 }
 0x2f0   :  { %1603 = vmatpush1.bf16.msra.mxu0 %v1870_v43  ;;  %1646 = vmatpush1.bf16.msra.mxu1 %v1872_v46 }
 0x2f1   :  { %1604 = vmatprep.subr.bf16.mxu0 %v1863_v48  ;;  %1647 = vmatprep.subr.bf16.mxu1 %v1865_v49 }
 0x2f4   :  { %1605 = vmatpush1.bf16.msra.mxu0 %v1862_v54  ;;  %1648 = vmatpush1.bf16.msra.mxu1 %v1864_v55 }
 0x2f5   :  { %1606 = vmatprep.subr.bf16.mxu0 %v1855_v56  ;;  %1649 = vmatprep.subr.bf16.mxu1 %v1857_v57 }
 0x2f8   :  { %1607 = vmatpush1.bf16.msra.mxu0 %v1854_v58  ;;  %1650 = vmatpush1.bf16.msra.mxu1 %v1856_v59 }
 0x2fb   :  { %1625 = vmatmul.mubr.bf16.vlgmr.msra.gmra.mxu0 %v2425_v4  ;;  %1668 = vmatmul.mubr.bf16.vlgmr.msra.gmra.mxu1 %v2425_v4 }
 0x39b   :  { %v1540_v3 = vpop.f32.mrf.mxu0  ;;  %v1583_v5 = vpop.f32.mrf.mxu1 }
 0x39c   :  { %v1541_v7 = vadd.f32 %v1540_v3, %v1149_v63  ;;  %v1584_v8 = vadd.f32 %v1583_v5, %v1157_v0 }
 0x39d   :  { %v1542_v6 = vpop.f32.mrf.mxu0  ;;  %v1585_v4 = vpop.f32.mrf.mxu1 }
 0x39e   :  { %v1543_v9 = vadd.f32 %v1542_v6, %v1153_v1  ;;  %v1586_v10 = vadd.f32 %v1585_v4, %v1161_v2 }
 0x39f   :  { %v1544_v11 = vpop.f32.mrf.mxu0  ;;  %v1587_v12 = vpop.f32.mrf.mxu1 }
 0x3a0   :  { %v1922_v13 = vpack.c.bf16 %v1543_v9, %v1541_v7  ;;  %v1923_v14 = vpack.c.bf16 %v1586_v10, %v1584_v8  ;;  %v1545_v45 = vadd.f32 %v1544_v11, %v1149_v63  ;;  %v1588_v47 = vadd.f32 %v1587_v12, %v1157_v0 }
 0x3a1   :  { %v1546_v15 = vpop.f32.mrf.mxu0  ;;  %v1589_v17 = vpop.f32.mrf.mxu1 }
 0x3a2   :  { %1726 = vst [vmem:[%s2480_s10] sm:$0xff] %v1922_v13  ;;  %1727 = vst [vmem:[%s2480_s10 + $0x8] sm:$0xff] %v1923_v14  ;;  %v1547_v18 = vadd.f32 %v1546_v15, %v1153_v1  ;;  %v1590_v20 = vadd.f32 %v1589_v17, %v1161_v2 }
 0x3a4   :  { %v1926_v21 = vpack.c.bf16 %v1547_v18, %v1545_v45  ;;  %v1927_v23 = vpack.c.bf16 %v1590_v20, %v1588_v47 }
 0x3a6   :  { %1730 = vst [vmem:[%s2480_s10 + $0x20] sm:$0xff] %v1926_v21  ;;  %1731 = vst [vmem:[%s2480_s10 + $0x28] sm:$0xff] %v1927_v23 }
 0x3bb   :  { %v1626_v29 = vpop.f32.mrf.mxu0  ;;  %v1669_v32 = vpop.f32.mrf.mxu1 }
 0x3bc   :  { %v1627_v33 = vadd.f32 %v1626_v29, %v1165_v22  ;;  %v1670_v34 = vadd.f32 %v1669_v32, %v1173_v26 }
 0x3bd   :  { %v1628_v30 = vpop.f32.mrf.mxu0  ;;  %v1671_v31 = vpop.f32.mrf.mxu1 }
 0x3be   :  { %v1629_v35 = vadd.f32 %v1628_v30, %v1169_v27  ;;  %v1672_v36 = vadd.f32 %v1671_v31, %v1177_v28 }
 0x3bf   :  { %v1630_v37 = vpop.f32.mrf.mxu0  ;;  %v1673_v38 = vpop.f32.mrf.mxu1 }
 0x3c0   :  { %v1924_v39 = vpack.c.bf16 %v1629_v35, %v1627_v33  ;;  %v1925_v40 = vpack.c.bf16 %v1672_v36, %v1670_v34  ;;  %v1631_v44 = vadd.f32 %v1630_v37, %v1165_v22  ;;  %v1674_v43 = vadd.f32 %v1673_v38, %v1173_v26 }
 0x3c1   :  { %v1632_v41 = vpop.f32.mrf.mxu0  ;;  %v1675_v42 = vpop.f32.mrf.mxu1 }
 0x3c2   :  { %1728 = vst [vmem:[%s2480_s10 + $0x10] sm:$0xff] %v1924_v39  ;;  %1729 = vst [vmem:[%s2480_s10 + $0x18] sm:$0xff] %v1925_v40  ;;  %v1633_v46 = vadd.f32 %v1632_v41, %v1169_v27  ;;  %v1676_v48 = vadd.f32 %v1675_v42, %v1177_v28 }
 0x3c4   :  { %v1928_v49 = vpack.c.bf16 %v1633_v46, %v1631_v44  ;;  %v1929_v50 = vpack.c.bf16 %v1676_v48, %v1674_v43 }
 0x3c6   :  { %1732 = vst [vmem:[%s2480_s10 + $0x30] sm:$0xff] %v1928_v49  ;;  %1733 = vst [vmem:[%s2480_s10 + $0x38] sm:$0xff] %v1929_v50 }
 0x3c7   :  { %1750 = vsyncpa [#allocation3], 1 }
 0x3c8   :  { %1751 = vsyncpa [#allocation5], 1 }

</bundles_post_ra>
